<compile_context>
chip_gen: v7x
topology: tpu7x:2x2x1
jax: 0.10.0
libtpu: 0.0.40
codegen_flags: <defaults>
</compile_context>

<pallas_src>
import math

import jax
import jax.numpy as jnp
from jax.experimental import pallas as pl
from jax.experimental.pallas import tpu as pltpu

EPS = 1e-4
LANE = 128


def _round_up(a, b):
    return ((a + b - 1) // b) * b


def _cdiv(a, b):
    return -(-a // b)


def bifpn_kernel(wn_ref, x_ref, o_ref):
    # wn_ref: SMEM (L,)        swish-normalized fusion weights (f32)
    # x_ref : VMEM (L, TR, TN) tile of the stacked feature maps
    # o_ref : VMEM (TR, TN)    fused output tile
    L = x_ref.shape[0]
    # Unrolled scalar-weighted accumulate over the (tiny) stack axis: keeps a
    # single (TR, TN) f32 accumulator live instead of an (L, TR, TN) temporary.
    acc = wn_ref[0] * x_ref[0].astype(jnp.float32)
    for i in range(1, L):  # static unroll; L is small (2-3) for BiFPN
        acc = acc + wn_ref[i] * x_ref[i].astype(jnp.float32)
    o_ref[...] = acc.astype(o_ref.dtype)


def _choose_2d_view(inner_shape, sublane):
    """Factor prod(inner_shape) into (R, N) with N a large multiple of 128."""
    total = math.prod(inner_shape)
    # Prefer a lane width that divides the flat size AND leaves sublane-aligned
    # rows: fully lane-dense, unmasked stores everywhere.
    for n in (4096, 2048, 1024, 512, 256, 128):
        if total % n == 0 and (total // n) % sublane == 0:
            return total // n, n
    for n in (4096, 2048, 1024, 512, 256, 128):
        if total % n == 0:
            return total // n, n
    # Fallback (flat size not a multiple of 128): spatial -> lanes, rest ->
    # sublanes; ragged edge blocks are masked by Pallas (exact for this op).
    if len(inner_shape) >= 2:
        n = inner_shape[-1] * inner_shape[-2]
    else:
        n = inner_shape[-1]
    return total // n, n


def _vmem_capacity_bytes():
    try:
        return int(pltpu.get_tpu_info().vmem_capacity_bytes)
    except Exception:
        return 64 << 20  # conservative: v7x per-TensorCore VMEM


def bi_fpn(x, weight, *, tr=512, tn=2048):
    """BiFPN weighted feature fusion.

    x:      (L, B, C, H, W) stack of feature maps (any inner rank works)
    weight: (L,) raw (unnormalized) fusion weights
    returns sum_i [w_i / (sum_j w_j*sigmoid(w_j) + eps)] * x[i]
    """
    L = x.shape[0]
    inner_shape = x.shape[1:]
    itemsize = jnp.dtype(x.dtype).itemsize
    sublane = max(8, 32 // itemsize)  # dtype-aware sublane alignment

    # Swish-normalize the L fusion weights once, outside the per-tile body.
    w = weight.astype(jnp.float32)
    wn = w / (jnp.sum(w * jax.nn.sigmoid(w)) + EPS)  # (L,)

    # Lane-dense 2-D view of the flattened feature maps (plain reshape, no pad).
    R, N = _choose_2d_view(inner_shape, sublane)
    xf = x.reshape(L, R, N)

    # --- tile sizing: device-VMEM aware, dtype-aware alignment --------------
    vmem_cap = _vmem_capacity_bytes()
    tr_eff = min(tr, _round_up(R, sublane))
    tn_eff = min(tn, _round_up(N, LANE))

    def footprint(tr_, tn_):
        # double-buffered (L, tr, tn) input block + double-buffered output tile
        return 2 * (L + 1) * tr_ * tn_ * itemsize

    budget = vmem_cap // 2
    for _ in range(16):
        if footprint(tr_eff, tn_eff) <= budget:
            break
        if tn_eff > 4 * LANE:
            tn_eff = max(4 * LANE, _round_up(tn_eff // 2, LANE))
        elif tr_eff > sublane:
            tr_eff = max(sublane, _round_up(tr_eff // 2, sublane))
        else:
            break

    # Keep several parallel grid steps so v7x shards across both TensorCores;
    # this only fires when the whole problem fits inside a couple of mega-tiles.
    for _ in range(12):
        gr, gn = _cdiv(R, tr_eff), _cdiv(N, tn_eff)
        if gr * gn >= 4:
            break
        new_tr = max(sublane, _round_up(tr_eff // 2, sublane))
        new_tn = max(LANE, _round_up(tn_eff // 2, LANE))
        if new_tr < tr_eff and _cdiv(R, new_tr) > gr:
            tr_eff = new_tr
        elif new_tn < tn_eff and _cdiv(N, new_tn) > gn:
            tn_eff = new_tn
        else:
            break

    grid = (_cdiv(R, tr_eff), _cdiv(N, tn_eff))  # ragged edge blocks are masked

    vmem_bytes = int(min(vmem_cap,
                         max(32 << 20, footprint(tr_eff, tn_eff) + (4 << 20))))

    cost = pl.CostEstimate(
        flops=(2 * L - 1) * R * N,
        transcendentals=0,
        bytes_accessed=(L + 1) * R * N * itemsize,
    )

    out_flat = pl.pallas_call(
        bifpn_kernel,
        out_shape=jax.ShapeDtypeStruct((R, N), x.dtype),
        grid_spec=pltpu.PrefetchScalarGridSpec(
            num_scalar_prefetch=0,
            grid=grid,
            in_specs=[
                # L normalized scalar weights, resident in SMEM (no per-tile
                # sigmoid / cross-lane reduction, no vreg padding).
                pl.BlockSpec(memory_space=pltpu.MemorySpace.SMEM),
                # Stacked feature maps tiled over (sublane rows, lanes).
                pl.BlockSpec((L, tr_eff, tn_eff), lambda i, j: (0, i, j)),
            ],
            out_specs=pl.BlockSpec((tr_eff, tn_eff), lambda i, j: (i, j)),
        ),
        compiler_params=pltpu.CompilerParams(
            dimension_semantics=("parallel", "parallel"),
            vmem_limit_bytes=vmem_bytes,
        ),
        cost_estimate=cost,
    )(wn, xf)

    return out_flat.reshape(inner_shape)


def bi_fpn_reference(x, weight):
    w = weight.astype(jnp.float32)
    weights = w / (jnp.sum(w * jax.nn.sigmoid(w)) + EPS)
    bcast = weights.reshape((-1,) + (1,) * (x.ndim - 1))
    return jnp.sum(bcast * x, axis=0).astype(x.dtype)


if __name__ == "__main__":
    key = jax.random.PRNGKey(0)

    # Parameter init matches nn.Parameter(torch.ones(length)) — deterministic.
    L, B, C, H, W = 3, 2, 4, 16, 16
    weight = jnp.ones((L,), dtype=jnp.float32)
    x = jax.random.normal(key, (L, B, C, H, W), dtype=jnp.float32)

    out = jax.block_until_ready(bi_fpn(x, weight))
    ref = bi_fpn_reference(x, weight)
    assert out.shape == (B, C, H, W)
    assert jnp.allclose(out, ref, atol=1e-5, rtol=1e-5)

    # Non-128-divisible shape exercises the masked ragged-edge path (no pad).
    x2 = jax.random.normal(jax.random.PRNGKey(1), (2, 1, 3, 5, 7), jnp.float32)
    w2 = jnp.ones((2,), dtype=jnp.float32)
    out2 = jax.block_until_ready(bi_fpn(x2, w2))
    assert jnp.allclose(out2, bi_fpn_reference(x2, w2), atol=1e-5, rtol=1e-5)

    print("KERNEL_OK")
</pallas_src>

<mosaic_0001>
module attributes {stable_mosaic.version = 11 : i64} {
  func.func @bifpn_kernel(%arg0: i32, %arg1: i32, %arg2: memref<3xf32, #tpu.memory_space<smem>>, %arg3: memref<3x8x128xf32, #tpu.memory_space<vmem>>, %arg4: memref<8x128xf32, #tpu.memory_space<vmem>>) attributes {dimension_semantics = [#tpu.dimension_semantics<parallel>, #tpu.dimension_semantics<parallel>], iteration_bounds = array<i64: 1, 2>, scalar_prefetch = 0 : i64, scratch_operands = 0 : i64, tpu.core_type = #tpu.core_type<tc>, window_params = [{transform_indices = @transform_0, window_bounds = array<i64: 3>}, {transform_indices = @transform_1, window_bounds = array<i64: 3, 8, 128>}, {transform_indices = @transform_2, window_bounds = array<i64: 8, 128>}]} {
    %c0 = arith.constant 0 : index
    %0 = memref.load %arg2[%c0] : memref<3xf32, #tpu.memory_space<smem>>
    %c0_0 = arith.constant 0 : index
    %c0_1 = arith.constant 0 : index
    %c0_2 = arith.constant 0 : index
    %1 = vector.load %arg3[%c0_0, %c0_1, %c0_2] : memref<3x8x128xf32, #tpu.memory_space<vmem>>, vector<1x8x128xf32>
    %2 = vector.shape_cast %1 : vector<1x8x128xf32> to vector<8x128xf32>
    %3 = vector.broadcast %0 : f32 to vector<8x128xf32>
    %4 = arith.mulf %3, %2 : vector<8x128xf32>
    %c1 = arith.constant 1 : index
    %5 = memref.load %arg2[%c1] : memref<3xf32, #tpu.memory_space<smem>>
    %c1_3 = arith.constant 1 : index
    %c0_4 = arith.constant 0 : index
    %c0_5 = arith.constant 0 : index
    %6 = vector.load %arg3[%c1_3, %c0_4, %c0_5] : memref<3x8x128xf32, #tpu.memory_space<vmem>>, vector<1x8x128xf32>
    %7 = vector.shape_cast %6 : vector<1x8x128xf32> to vector<8x128xf32>
    %8 = vector.broadcast %5 : f32 to vector<8x128xf32>
    %9 = arith.mulf %8, %7 : vector<8x128xf32>
    %10 = arith.addf %4, %9 : vector<8x128xf32>
    %c2 = arith.constant 2 : index
    %11 = memref.load %arg2[%c2] : memref<3xf32, #tpu.memory_space<smem>>
    %c2_6 = arith.constant 2 : index
    %c0_7 = arith.constant 0 : index
    %c0_8 = arith.constant 0 : index
    %12 = vector.load %arg3[%c2_6, %c0_7, %c0_8] : memref<3x8x128xf32, #tpu.memory_space<vmem>>, vector<1x8x128xf32>
    %13 = vector.shape_cast %12 : vector<1x8x128xf32> to vector<8x128xf32>
    %14 = vector.broadcast %11 : f32 to vector<8x128xf32>
    %15 = arith.mulf %14, %13 : vector<8x128xf32>
    %16 = arith.addf %10, %15 : vector<8x128xf32>
    %c0_9 = arith.constant 0 : index
    %c0_10 = arith.constant 0 : index
    %17 = vector.load %arg4[%c0_9, %c0_10] : memref<8x128xf32, #tpu.memory_space<vmem>>, vector<8x128xf32>
    tpu.vector_store %arg4[%c0_9, %c0_10], %16 {strides = array<i32>} : memref<8x128xf32, #tpu.memory_space<vmem>>, vector<8x128xf32>,
    return
  }
  func.func @transform_0(%arg0: i32, %arg1: i32) -> i32 {
    %c0_i32 = arith.constant 0 : i32
    %c0_i32_0 = arith.constant 0 : i32
    return %c0_i32 : i32
  }
  func.func @transform_1(%arg0: i32, %arg1: i32) -> (i32, i32, i32) {
    %c0_i32 = arith.constant 0 : i32
    %c0_i32_0 = arith.constant 0 : i32
    return %c0_i32, %arg0, %arg1 : i32, i32, i32
  }
  func.func @transform_2(%arg0: i32, %arg1: i32) -> (i32, i32) {
    %c0_i32 = arith.constant 0 : i32
    return %arg0, %arg1 : i32, i32
  }
}

</mosaic_0001>

<bundles_post_ra>
// kernel: tpu_custom_call.1
= control target key start
LH: loop header
LB: loop body
LE: loop exit
PB: predicated region body
PF: predicated region fallthrough
CT: control target
= control target key end

     0   :  { %7 = vsyncpa [#allocation5], 0  ;;  %s765_s0 = inlined_call_operand.hbm [shape: f32[3], index: 0, kind: input, shape index: {}]   ;;  %s766_s1 = inlined_call_operand.hbm [shape: f32[3,8,256], index: 1, kind: input, shape index: {}]   ;;  %s767_s2 = inlined_call_operand.hbm [shape: f32[8,256], index: 2, kind: output, shape index: {}]  }
   0x1   :  { %8 = vsyncpa [#allocation3], 0 }
   0x2   :  { %10 = vsyncpa [#allocation3 + $0x1], 0 }
   0x3   :  { %11 = vsyncpa [#allocation4], 0 }
   0x4   :  { %13 = vsyncpa [#allocation4 + $0x1], 0  ;;  %s565_s9 = smov 0   ;;  %s567_s10 = smov 0  }
   0x5   :  { %s569_s11 = smov 0   ;;  %s571_s12 = smov 0  }
   0x6   :  { %s573_s13 = smov 0   ;;  %s575_s14 = smov 0  }
   0x7 LB: > { %s318_s15 = sadd.s32 4294967295, %s542_s14   ;;  %s319_s16 = sadd.s32 4294967294, %s542_s14   ;;  %s542_s14 = sphi %s575_s14, %s19_s14   ;;  %s538_s13 = sphi %s573_s13, %s787_s13   ;;  %s534_s12 = sphi %s571_s12, %s786_s12   ;;  %s530_s11 = sphi %s569_s11, %s785_s11   ;;  %s526_s10 = sphi %s567_s10, %s784_s10   ;;  %s522_s9 = sphi %s565_s9, %s783_s9  }
   0x8   : > { %s61_s17 = sadd.s32 1, %s530_s11  ;;  %p68_p0 = scmp.ne.s32.totalorder %s530_s11, %s526_s10 }
   0x9   : > { %p69_p1 = scmp.eq.s32.totalorder %s542_s14, 0  ;;  %p74_p2 = scmp.ne.s32.totalorder %s526_s10, %s522_s9 }
   0xa   : > { %p603_p3 = scmp.eq.s32.totalorder %s318_s15, 0  ;;  %p100_p4 = scmp.eq.s32.totalorder %s318_s15, 1 }
   0xb   : > { %p70_p5 = por %p69_p1, %p68_p0  ;;  %p106_p6 = scmp.eq.s32.totalorder %s319_s16, 1 }
   0xc   : > { %s772_s18 = scalar_select %p603_p3, 1, 0 }
   0xd   : > { %p609_p7 = por %p603_p3, %p74_p2  ;;  %p613_p8 = por %p100_p4, %p68_p0 }
   0xe   : > { %p617_p9 = por %p106_p6, %p74_p2  ;;  %p320_p10 = scmp.ge.s32.totalorder %s542_s14, 1 }
   0xf   : > { %s773_s19 = scalar_select %p609_p7, 1, 0 }
  0x10   : > { %s774_s20 = scalar_select %p613_p8, 1, 0 }
  0x11   : > { %s775_s21 = scalar_select %p617_p9, 1, 0 }
  0x12   : > { %p113_p11 = scmp.lt.s32.totalorder %s542_s14, 3  ;;  %p358_p1 = scmp.lt.s32.totalorder %s542_s14, 2 }
  0x13   : > { %s135_s23 = sand.u32 1, %s530_s11   ;;  %s28_s25 = sadd.s32 1, %s538_s13 }
  0x14   : > { %p624_p13 = pnand %p320_p10, %p113_p11  ;;  %p632_p0 = pnand %p358_p1, %p70_p5 }
  0x15   : > { %s335_s26 = smul.u32 24, %s135_s23  ;;  %p29_p4 = scmp.ge.s32.totalorder %s28_s25, 2 }
  0x16   : > { %p345_p7 = pneg %p624_p13  ;;  %s413_s29 = scalar_lea.hbm %s765_s0, 16 }
  0x17   : > { %p414_p6 = scmp.ne.s32.totalorder %s765_s0, %s413_s29  ;;  %p420_p5 = scmp.lt.u32.totalorder %s413_s29, %s765_s0 }
  0x18   : > { %p346_p2 = pnand %p345_p7, %p603_p3 }
  0x1a   : > { %p415_p10 = pneg %p346_p2 }
  0x1c   : > { %p416_p11 = pnand %p415_p10, %p414_p6 }
  0x1e   : > { %p417_p12 = pneg %p416_p11 }
  0x20   : > { %p422_p1 = pnand %p420_p5, %p417_p12 }
  0x22   : > { %425 = shalt.err (!%p422_p1)
}
  0x23   : > { %s544_s6 = smov [#allocation2]   ;;  %s789_s25 = smov (%p29_p4, %s28_s25), 0 }
  0x24   : > { %348 = dma.hbm_to_smem (!%p346_p2), %s765_s0, 16, %s544_s6, [#allocation5]  }
  0x25   : > { %s323_s15 = sshll.u32 %s538_s13, 7  ;;  %s57_s16 = ssub.s32 %s538_s13, %s789_s25 }
  0x26   : > { %s659_s29 = scalar_lea.hbm %s766_s1, %s323_s15  ;;  %p59_p7 = scmp.eq.s32.totalorder %s57_s16, 0 }
  0x27   : > { %s139_s30 = scalar_lea.vmem [#allocation6], %s335_s26  ;;  %s668_s5 = scalar_lea.sflag [#allocation3], %s135_s23 }
  0x28   : > { %s147_s3 = sshll.u32 %s139_s30, 4  ;;  %s426_s6 = scalar_lea.hbm %s659_s29, 384  ;;  %s661_s3 = int_to_ptr.vmem [resolvable:$true] %s147_s3 }
  0x29   : > { %s666_s4 = scalar_select %p59_p7, %s530_s11, %s61_s17  }
  0x2a   : > { %p427_p12 = scmp.ne.s32.totalorder %s659_s29, %s426_s6  ;;  %p428_p2 = pneg %p632_p0 }
  0x2b   : > { %s431_s26 = scalar_lea.hbm %s766_s1, 768  ;;  %p432_p10 = scmp.lt.u32.totalorder %s659_s29, %s766_s1 }
  0x2c   : > { %p429_p4 = pnand %p428_p2, %p427_p12  ;;  %p433_p11 = scmp.lt.u32.totalorder %s431_s26, %s426_s6 }
  0x2d   : > { %p435_p1 = scmp.lt.u32.totalorder %s426_s6, %s659_s29 }
  0x2e   : > { %p430_p6 = pneg %p429_p4  ;;  %p434_p5 = por %p433_p11, %p432_p10 }
  0x30   : > { %p436_p7 = por %p435_p1, %p434_p5 }
  0x32   : > { %p437_p9 = pnand %p436_p7, %p430_p6 }
  0x34   : > { %440 = shalt.err (!%p437_p9)
}
  0x35   : > { %s441_s17 = scalar_lea.vmem %s661_s3, 384  ;;  %s545_s23 = smov [#allocation6]  }
  0x36   : > { %p442_p12 = scmp.ne.s32.totalorder %s661_s3, %s441_s17  ;;  %s446_s27 = sshll.u32 %s545_s23, 4  ;;  %s447_s27 = int_to_ptr.vmem [resolvable:$false] %s446_s27 }
  0x37   : > { %s448_s28 = scalar_lea.vmem %s447_s27, 768  ;;  %p449_p3 = scmp.lt.s32.totalorder %s661_s3, %s447_s27 }
  0x38   : > { %p444_p4 = pnand %p442_p12, %p428_p2  ;;  %p450_p10 = scmp.lt.s32.totalorder %s448_s28, %s441_s17 }
  0x3a   : > { %p445_p8 = pneg %p444_p4  ;;  %p451_p11 = por %p450_p10, %p449_p3 }
  0x3c   : > { %p452_p5 = pnand %p451_p11, %p445_p8 }
  0x3e   : > { %455 = shalt.err (!%p452_p5)
}
  0x3f   : > { %s546_s30 = smov 256   ;;  %s547_s6 = smov 128  }
  0x40   : > { %s548_s7 = smov 8   ;;  %159 = sbr.rel (%p624_p13) target bundleno = 107 (0x6b), region = 28 }
  0x41   : > { %352 = dma.hbm_to_vmem [thread:$0]  (!%p632_p0), %s659_s29, 384, %s661_s3, %s668_s5, %s546_s30, %s547_s6, %s548_s7  }
  0x42   : > { %p778_p9 = scmp.ne.s32.totalorder (!%p624_p13), %s772_s18, 0 }
  0x47   : > { %509 = dma.done.wait (%p778_p9), [#allocation5], 16  }
  0x48   : > { %511 = vsyncadd (%p778_p9), [#allocation5], 4294967280  ;;  %s703_s8 = sand.u32 1, %s526_s10   ;;  %p779_p3 = scmp.ne.s32.totalorder %s773_s19, 0 }
  0x49   : > { %s336_s26 = smul.u32 24, %s703_s8  ;;  %s166_s15 = scalar_lea.sflag [#allocation3], %s703_s8 }
  0x4b   : > { %s169_s16 = scalar_lea.vmem [#allocation6], %s336_s26 }
  0x4c   : > { %513 = dma.done.wait (%p779_p3), %s166_s15, 384  }
  0x4d   : > { %515 = vsyncadd (%p779_p3), %s166_s15, 4294966912 }
  0x4e   : > { %174 = sfence }
  0x4f   : > { %s191_s22 = sld [smem:[#allocation2]]  ;;  %s327_s18 = sld [smem:[#allocation2 + $0x1]]  ;;  %v192_v0 = vld [vmem:[%s169_s16] sm:$0xff]  ;;  %v328_v1 = vld [vmem:[%s169_s16 + $0x8] sm:$0xff]  ;;  %v330_v3 = vld [vmem:[%s169_s16 + $0x10] sm:$0xff] }
  0x50   : > { %s326_s24 = sshll.u32 %s703_s8, 3  ;;  %s329_s29 = sld [smem:[#allocation2 + $0x2]] }
  0x51   : > { %s190_s3 = scalar_lea.vmem [#allocation7], %s326_s24  ;;  %s332_s5 = sshll.u32 %s534_s12, 7 }
  0x52   : > { %s224_s19 = sshll.u32 %s190_s3, 4  ;;  %s718_s27 = scalar_lea.hbm %s767_s2, %s332_s5  ;;  %s713_s19 = int_to_ptr.vmem [resolvable:$true] %s224_s19 }
  0x53   : > { %s209_s28 = scalar_lea.sflag [#allocation4], %s703_s8  ;;  %s456_s30 = scalar_lea.vmem %s713_s19, 128 }
  0x54   : > { %p457_p8 = scmp.ne.s32.totalorder %s713_s19, %s456_s30  ;;  %p780_p13 = scmp.ne.s32.totalorder %s774_s20, 0 }
  0x55   : > { %v193_v2 = vstv %s191_s22  ;;  %v198_v5 = vstv %s327_s18  ;;  %s549_s12 = smov [#allocation7]  }
  0x56   : > { %v194_v4 = vmul.f32 %v193_v2, %v192_v0  ;;  %v199_v6 = vmul.f32 %v328_v1, %v198_v5  ;;  %v204_v7 = vstv %s329_s29  ;;  %p458_p0 = pnand %p457_p8, %p780_p13  ;;  %s460_s6 = sshll.u32 %s549_s12, 4  ;;  %s461_s6 = int_to_ptr.vmem [resolvable:$false] %s460_s6 }
  0x57   : > { %v205_v8 = vmul.f32 %v330_v3, %v204_v7  ;;  %s462_s7 = scalar_lea.vmem %s461_s6, 256  ;;  %p463_p6 = scmp.lt.s32.totalorder %s713_s19, %s461_s6 }
  0x58   : > { %v200_v9 = vadd.f32 %v199_v6, %v194_v4  ;;  %p459_p2 = pneg %p458_p0  ;;  %p464_p1 = scmp.lt.s32.totalorder %s462_s7, %s456_s30 }
  0x5a   : > { %v206_v10 = vadd.f32 %v205_v8, %v200_v9  ;;  %p465_p7 = por %p464_p1, %p463_p6 }
  0x5c   : > { %207 = vst [vmem:[%s190_s3] sm:$0xff] %v206_v10  ;;  %p466_p12 = pnand %p465_p7, %p459_p2 }
  0x5e   : > { %469 = shalt.err (!%p466_p12)
}
  0x5f   : > { %s470_s8 = scalar_lea.hbm %s718_s27, 128  ;;  %s474_s16 = scalar_lea.hbm %s767_s2, 256 }
  0x60   : > { %p471_p4 = scmp.ne.s32.totalorder %s718_s27, %s470_s8  ;;  %p475_p5 = scmp.lt.u32.totalorder %s718_s27, %s767_s2 }
  0x61   : > { %p476_p9 = scmp.lt.u32.totalorder %s474_s16, %s470_s8  ;;  %p478_p8 = scmp.lt.u32.totalorder %s470_s8, %s718_s27 }
  0x62   : > { %p472_p10 = pnand %p471_p4, %p780_p13 }
  0x63   : > { %p477_p3 = por %p476_p9, %p475_p5 }
  0x64   : > { %p473_p11 = pneg %p472_p10 }
  0x65   : > { %p479_p0 = por %p478_p8, %p477_p3 }
  0x67   : > { %p480_p2 = pnand %p479_p0, %p473_p11 }
  0x69   : > { %483 = shalt.err (!%p480_p2)
}
  0x6a   : > { %343 = dma.vmem_to_hbm [thread:$0]  (%p780_p13), %s713_s19, 128, %s718_s27, %s209_s28  }
  0x6b PF: > { %s236_s24 = sand.u32 1, %s522_s9   ;;  %p781_p6 = scmp.ne.s32.totalorder %s775_s21, 0 }
  0x6c   : > { %p782_p1 = scmp.ge.s32.totalorder %s542_s14, 2  ;;  %s237_s29 = scalar_lea.sflag [#allocation4], %s236_s24 }
  0x6e   : > { %p354_p7 = pnand %p782_p1, %p781_p6 }
  0x70   : > { %517 = dma.done.wait (!%p354_p7), %s237_s29, 128  }
  0x71   : > { %519 = vsyncadd (!%p354_p7), %s237_s29, 4294967168  ;;  %s19_s14 = sadd.s32 1, %s542_s14   ;;  %s783_s9 = smov %s526_s10 }
  0x72   : > { %p16_p12 = scmp.ge.s32.totalorder %s19_s14, 4   ;;  %s784_s10 = smov %s530_s11 }
  0x73   : > { %s785_s11 = smov %s666_s4  ;;  %s786_s12 = smov %s538_s13 }
  0x74   : > { %s787_s13 = smov %s789_s25  ;;  %18 = sbr.rel (!%p16_p12) target bundleno = 7 (0x7), region = 80 }
  0x7b   :  { %242 = vsyncpa [#allocation3], 1 }
  0x7c   :  { %244 = vsyncpa [#allocation3 + $0x1], 1 }
  0x7d   :  { %245 = vsyncpa [#allocation4], 1 }
  0x7e   :  { %247 = vsyncpa [#allocation4 + $0x1], 1 }
  0x7f   :  { %248 = vsyncpa [#allocation5], 1 }
  0x80   :  { %250 = vsyncpa [#allocation5 + $0x1], 1 }

</bundles_post_ra>
